<compile_context>
chip_gen: v5e
topology: v5e:2x2
jax: 0.10.0
libtpu: 0.0.40
codegen_flags: <defaults>
</compile_context>

<pallas_src>
import functools
import math

import jax
import jax.numpy as jnp
from jax.experimental import pallas as pl
from jax.experimental.pallas import tpu as pltpu


# --------------------------------------------------------------------------
# Small problems: everything in VMEM, single un-gridded kernel.
# --------------------------------------------------------------------------
def _fused_single_kernel(x_ref, w_ref, b_ref, fold_ref, gamma_ref, beta_ref,
                         out_ref, *, batch_size, eps, matmul_dtype):
    x = x_ref[...].astype(matmul_dtype)
    dense = jnp.dot(x, w_ref[...], preferred_element_type=jnp.float32) + b_ref[...]

    s = jnp.sum(dense, axis=0, keepdims=True)               # (1, lane_dim)
    sq = jnp.sum(dense * dense, axis=0, keepdims=True)
    # Fold the lane-groups to per-feature totals (replicated across groups)
    # without leaving the (1, lane_dim) layout: fold = kron(1_{GxG}, I_D).
    s = jnp.dot(s, fold_ref[...], preferred_element_type=jnp.float32)
    sq = jnp.dot(sq, fold_ref[...], preferred_element_type=jnp.float32)

    inv_n = 1.0 / batch_size
    mean = s * inv_n
    var = jnp.maximum(sq * inv_n - mean * mean, 0.0)         # biased (training)
    rstd = jax.lax.rsqrt(var + eps)
    scale = gamma_ref[...] * rstd                            # folded BN affine
    shift = beta_ref[...] - mean * scale
    out_ref[...] = jnp.maximum(dense * scale + shift, 0.0)


# --------------------------------------------------------------------------
# Large problems: grid = (2, num_tiles).  Sweep 0: stats; sweep 1: apply.
# --------------------------------------------------------------------------
def _fused_sweep_kernel(x_ref, w_ref, b_ref, fold_ref, gamma_ref, beta_ref,
                        out_ref, sum_acc, sq_acc, affine, *,
                        batch_size, eps, matmul_dtype):
    sweep = pl.program_id(0)
    tile = pl.program_id(1)
    n_tiles = pl.num_programs(1)

    x = x_ref[...].astype(matmul_dtype)
    dense = jnp.dot(x, w_ref[...], preferred_element_type=jnp.float32) + b_ref[...]

    @pl.when(sweep == 0)
    def _accumulate():
        @pl.when(tile == 0)
        def _init():
            sum_acc[...] = jnp.zeros_like(sum_acc)
            sq_acc[...] = jnp.zeros_like(sq_acc)

        sum_acc[...] += jnp.sum(dense, axis=0, keepdims=True)
        sq_acc[...] += jnp.sum(dense * dense, axis=0, keepdims=True)

        @pl.when(tile == n_tiles - 1)
        def _finalize():
            inv_n = 1.0 / batch_size
            s = jnp.dot(sum_acc[...], fold_ref[...],
                        preferred_element_type=jnp.float32)
            sq = jnp.dot(sq_acc[...], fold_ref[...],
                         preferred_element_type=jnp.float32)
            mean = s * inv_n
            var = jnp.maximum(sq * inv_n - mean * mean, 0.0)
            rstd = jax.lax.rsqrt(var + eps)
            scale = gamma_ref[...] * rstd
            shift = beta_ref[...] - mean * scale
            affine[0:1, :] = scale
            affine[1:2, :] = shift

    @pl.when(sweep == 1)
    def _normalize():
        out_ref[...] = jnp.maximum(
            dense * affine[0:1, :] + affine[1:2, :], 0.0)


# --------------------------------------------------------------------------
# Wrapper helpers.
# --------------------------------------------------------------------------
def _vmem_cap_bytes():
    try:
        cap = int(pltpu.get_tpu_info().vmem_capacity_bytes)
        if cap > 0:
            return cap
    except Exception:
        pass
    return 64 << 20          # conservative per-core fallback (v7x)


def _largest_divisor_mult8(n, upper):
    """Largest d with n % d == 0, d % 8 == 0, d <= upper (or None)."""
    best = None
    i = 1
    while i * i <= n:
        if n % i == 0:
            for d in (i, n // i):
                if d <= upper and d % 8 == 0 and (best is None or d > best):
                    best = d
        i += 1
    return best


# --------------------------------------------------------------------------
# Public entry point (matches the torch forward semantics).
# --------------------------------------------------------------------------
def attention_layer(data, label, params, *, n_heads,
                    matmul_dtype=jnp.bfloat16, block_rows=None, eps=1e-5):
    # seq_len == 1  =>  softmax(Q K^T / scale) == 1 exactly, so Q/K (and the
    # label input) never influence the output; only V + dense remain.
    del label
    B, data_dim = data.shape
    hidden_dim = params["wv"].shape[1]
    assert hidden_dim % n_heads == 0

    # Fold V-projection and dense projection into one (D, D) matmul.
    w_fused = params["wv"] @ params["wd"]                    # (D, D) f32
    b_fused = params["bv"] @ params["wd"] + params["bd"]     # (1, D) f32

    # Lane-dense packing: fold `group` batch rows into one 128-wide lane row.
    group = 128 // math.gcd(128, data_dim)
    if group * data_dim > 512 or B % group != 0:
        group = 1                    # fallback: correct, but masked stores
    lane_dim = group * data_dim
    rows = B // group

    eye_g = jnp.eye(group, dtype=jnp.float32)
    w_big = jnp.kron(eye_g, w_fused).astype(matmul_dtype)            # (GD, GD)
    b_big = jnp.tile(b_fused, (1, group)).astype(jnp.float32)        # (1, GD)
    fold = jnp.kron(jnp.ones((group, group), jnp.float32),
                    jnp.eye(data_dim, dtype=jnp.float32))            # (GD, GD)
    gamma_big = jnp.tile(params["gamma"].astype(jnp.float32), (1, group))
    beta_big = jnp.tile(params["beta"].astype(jnp.float32), (1, group))

    x2 = data.reshape(rows, lane_dim)

    # --- tile sizing from the per-chip VMEM budget ---------------------------
    cap = _vmem_cap_bytes()
    itemsize = jnp.dtype(matmul_dtype).itemsize
    row_bytes = lane_dim * 4
    fixed = lane_dim * lane_dim * (itemsize + 4) + 32 * lane_dim * 4
    budget = int(cap * 0.40)
    max_block = max((budget - fixed) // (4 * row_bytes), 8)   # 2x dbl-buffered in+out

    if block_rows is None:
        if rows <= max_block:
            block_rows = rows
        else:
            block_rows = _largest_divisor_mult8(rows, max_block) or rows
            # TODO(synk): if rows has no multiple-of-8 divisor <= max_block we
            # fall back to a single full-rows tile (may exceed the VMEM budget).
    assert rows % block_rows == 0
    assert block_rows == rows or block_rows % 8 == 0
    num_tiles = rows // block_rows

    tile_bytes = block_rows * row_bytes
    need = 4 * tile_bytes + fixed + (2 << 20)
    vmem_limit = int(min(max(2 * need, 16 << 20), int(cap * 0.9)))

    common = dict(batch_size=float(B), eps=eps, matmul_dtype=matmul_dtype)

    if num_tiles == 1:
        # Whole problem fits in one tile: single un-gridded launch.
        out2 = pl.pallas_call(
            functools.partial(_fused_single_kernel, **common),
            out_shape=jax.ShapeDtypeStruct((rows, lane_dim), jnp.float32),
            compiler_params=pltpu.CompilerParams(vmem_limit_bytes=vmem_limit),
        )(x2, w_big, b_big, fold, gamma_big, beta_big)
    else:
        out2 = pl.pallas_call(
            functools.partial(_fused_sweep_kernel, **common),
            grid=(2, num_tiles),
            in_specs=[
                pl.BlockSpec((block_rows, lane_dim), lambda s, i: (i, 0)),  # x tile
                pl.BlockSpec((lane_dim, lane_dim), lambda s, i: (0, 0)),    # W (resident)
                pl.BlockSpec((1, lane_dim), lambda s, i: (0, 0)),           # bias
                pl.BlockSpec((lane_dim, lane_dim), lambda s, i: (0, 0)),    # group fold
                pl.BlockSpec((1, lane_dim), lambda s, i: (0, 0)),           # gamma
                pl.BlockSpec((1, lane_dim), lambda s, i: (0, 0)),           # beta
            ],
            # Sweep 0 pins the output to block 0 (never written, never flushed);
            # sweep 1 walks the blocks and writes the real result.
            out_specs=pl.BlockSpec((block_rows, lane_dim),
                                   lambda s, i: (s * i, 0)),
            out_shape=jax.ShapeDtypeStruct((rows, lane_dim), jnp.float32),
            scratch_shapes=[
                pltpu.VMEM((1, lane_dim), jnp.float32),   # sum accumulator
                pltpu.VMEM((1, lane_dim), jnp.float32),   # sum-of-squares
                pltpu.VMEM((2, lane_dim), jnp.float32),   # folded BN affine
            ],
            compiler_params=pltpu.CompilerParams(
                dimension_semantics=("arbitrary", "arbitrary"),
                vmem_limit_bytes=vmem_limit),
        )(x2, w_big, b_big, fold, gamma_big, beta_big)

    return out2.reshape(B, data_dim)


# --------------------------------------------------------------------------
# Parameters + pure-JAX reference (faithful to the torch forward, incl. Q/K).
# --------------------------------------------------------------------------
def init_params(key, data_dim, label_dim, hidden_dim):
    ks = jax.random.split(key, 8)

    def lin(kw, kb, fan_in, fan_out):
        bound = 1.0 / math.sqrt(fan_in)
        w = jax.random.uniform(kw, (fan_in, fan_out), jnp.float32, -bound, bound)
        b = jax.random.uniform(kb, (1, fan_out), jnp.float32, -bound, bound)
        return w, b

    wq, bq = lin(ks[0], ks[1], label_dim, hidden_dim)   # unused by the kernel
    wk, bk = lin(ks[2], ks[3], data_dim, hidden_dim)    # (seq_len==1), kept
    wv, bv = lin(ks[4], ks[5], data_dim, hidden_dim)    # for parameter parity
    wd, bd = lin(ks[6], ks[7], hidden_dim, data_dim)
    return {
        "wq": wq, "bq": bq, "wk": wk, "bk": bk, "wv": wv, "bv": bv,
        "wd": wd, "bd": bd,
        "gamma": jnp.ones((1, data_dim), jnp.float32),
        "beta": jnp.zeros((1, data_dim), jnp.float32),
    }


def reference(data, label, params, *, n_heads):
    B = data.shape[0]
    hidden = params["wq"].shape[1]
    hd = hidden // n_heads
    q = (label @ params["wq"] + params["bq"]).reshape(B, 1, n_heads, hd).transpose(0, 2, 1, 3)
    k = (data @ params["wk"] + params["bk"]).reshape(B, 1, n_heads, hd).transpose(0, 2, 1, 3)
    v = (data @ params["wv"] + params["bv"]).reshape(B, 1, n_heads, hd).transpose(0, 2, 1, 3)
    att = jax.nn.softmax(jnp.einsum("bhqd,bhkd->bhqk", q, k) / math.sqrt(hd), axis=-1)
    out = jnp.einsum("bhqk,bhkd->bhqd", att, v).reshape(B, -1)
    out = out @ params["wd"] + params["bd"]
    mean = out.mean(axis=0, keepdims=True)
    var = ((out - mean) ** 2).mean(axis=0, keepdims=True)
    out = params["gamma"] * (out - mean) / jnp.sqrt(var + 1e-5) + params["beta"]
    return jnp.maximum(out, 0.0)


if __name__ == "__main__":
    data_dim, label_dim, hidden_dim, n_heads = 16, 8, 32, 4

    keys = jax.random.split(jax.random.PRNGKey(0), 5)
    params = init_params(keys[0], data_dim, label_dim, hidden_dim)

    # ---- small problem (B=32): single un-gridded fused kernel, bf16 MXU ----
    B_small = 32
    data_s = jax.random.normal(keys[1], (B_small, data_dim), jnp.float32)
    label_s = jax.random.normal(keys[2], (B_small, label_dim), jnp.float32)
    ref_s = reference(data_s, label_s, params, n_heads=n_heads)
    out_s = jax.block_until_ready(
        attention_layer(data_s, label_s, params, n_heads=n_heads))
    assert out_s.shape == (B_small, data_dim)
    assert jnp.allclose(out_s, ref_s, atol=5e-2, rtol=5e-2), "bf16 small mismatch"

    # ---- larger problem: exercises the 2-sweep grid kernel with cross-tile
    # BatchNorm statistics (f32 MXU operands, forced 8-tile batch grid). ------
    B_big = 4096
    data_b = jax.random.normal(keys[3], (B_big, data_dim), jnp.float32)
    label_b = jax.random.normal(keys[4], (B_big, label_dim), jnp.float32)
    ref_b = reference(data_b, label_b, params, n_heads=n_heads)
    out_b = jax.block_until_ready(
        attention_layer(data_b, label_b, params, n_heads=n_heads,
                        matmul_dtype=jnp.float32, block_rows=64))
    assert out_b.shape == (B_big, data_dim)
    assert jnp.allclose(out_b, ref_b, atol=1e-3, rtol=1e-3), "f32 grid mismatch"

    # Default auto-tiled bf16 path on the large batch as well.
    out_b16 = jax.block_until_ready(
        attention_layer(data_b, label_b, params, n_heads=n_heads))
    assert jnp.allclose(out_b16, ref_b, atol=5e-2, rtol=5e-2), "bf16 large mismatch"

    print("KERNEL_OK")
</pallas_src>

<mosaic_0001>
module attributes {stable_mosaic.version = 11 : i64} {
  func.func @_fused_single_kernel(%arg0: memref<4x128xf32, #tpu.memory_space<vmem>>, %arg1: memref<128x128xbf16, #tpu.memory_space<vmem>>, %arg2: memref<1x128xf32, #tpu.memory_space<vmem>>, %arg3: memref<128x128xf32, #tpu.memory_space<vmem>>, %arg4: memref<1x128xf32, #tpu.memory_space<vmem>>, %arg5: memref<1x128xf32, #tpu.memory_space<vmem>>, %arg6: memref<4x128xf32, #tpu.memory_space<vmem>>) attributes {dimension_semantics = [], scalar_prefetch = 0 : i64, scratch_operands = 0 : i64, tpu.core_type = #tpu.core_type<tc>} {
    %c0 = arith.constant 0 : index
    %c0_0 = arith.constant 0 : index
    %0 = vector.load %arg0[%c0, %c0_0] : memref<4x128xf32, #tpu.memory_space<vmem>>, vector<4x128xf32>
    %1 = arith.truncf %0 : vector<4x128xf32> to vector<4x128xbf16>
    %c0_1 = arith.constant 0 : index
    %c0_2 = arith.constant 0 : index
    %2 = vector.load %arg1[%c0_1, %c0_2] : memref<128x128xbf16, #tpu.memory_space<vmem>>, vector<128x128xbf16>
    %cst = arith.constant dense<0.000000e+00> : vector<4x128xf32>
    %3 = tpu.matmul %1, %2, %cst {dimension_numbers = #tpu.dot_dimension_numbers<[1], [0], [0], [1], [0, 0, 1, 1], [], []>} : vector<4x128xbf16>, vector<128x128xbf16>, vector<4x128xf32> -> vector<4x128xf32>
    %c0_3 = arith.constant 0 : index
    %c0_4 = arith.constant 0 : index
    %4 = vector.load %arg2[%c0_3, %c0_4] : memref<1x128xf32, #tpu.memory_space<vmem>>, vector<1x128xf32>
    %5 = vector.broadcast %4 : vector<1x128xf32> to vector<4x128xf32>
    %6 = arith.addf %3, %5 : vector<4x128xf32>
    %cst_5 = arith.constant dense<0.000000e+00> : vector<128xf32>
    %7 = vector.multi_reduction <add>, %6, %cst_5 [0] : vector<4x128xf32> to vector<128xf32>
    %8 = vector.shape_cast %7 : vector<128xf32> to vector<1x128xf32>
    %9 = arith.mulf %6, %6 : vector<4x128xf32>
    %cst_6 = arith.constant dense<0.000000e+00> : vector<128xf32>
    %10 = vector.multi_reduction <add>, %9, %cst_6 [0] : vector<4x128xf32> to vector<128xf32>
    %11 = vector.shape_cast %10 : vector<128xf32> to vector<1x128xf32>
    %c0_7 = arith.constant 0 : index
    %c0_8 = arith.constant 0 : index
    %12 = vector.load %arg3[%c0_7, %c0_8] : memref<128x128xf32, #tpu.memory_space<vmem>>, vector<128x128xf32>
    %cst_9 = arith.constant dense<0.000000e+00> : vector<1x128xf32>
    %13 = tpu.matmul %8, %12, %cst_9 {dimension_numbers = #tpu.dot_dimension_numbers<[1], [0], [0], [1], [0, 0, 1, 1], [], []>} : vector<1x128xf32>, vector<128x128xf32>, vector<1x128xf32> -> vector<1x128xf32>
    %c0_10 = arith.constant 0 : index
    %c0_11 = arith.constant 0 : index
    %14 = vector.load %arg3[%c0_10, %c0_11] : memref<128x128xf32, #tpu.memory_space<vmem>>, vector<128x128xf32>
    %cst_12 = arith.constant dense<0.000000e+00> : vector<1x128xf32>
    %15 = tpu.matmul %11, %14, %cst_12 {dimension_numbers = #tpu.dot_dimension_numbers<[1], [0], [0], [1], [0, 0, 1, 1], [], []>} : vector<1x128xf32>, vector<128x128xf32>, vector<1x128xf32> -> vector<1x128xf32>
    %cst_13 = arith.constant 3.125000e-02 : f32
    %16 = vector.broadcast %cst_13 : f32 to vector<1x128xf32>
    %17 = arith.mulf %13, %16 : vector<1x128xf32>
    %cst_14 = arith.constant 3.125000e-02 : f32
    %18 = vector.broadcast %cst_14 : f32 to vector<1x128xf32>
    %19 = arith.mulf %15, %18 : vector<1x128xf32>
    %20 = arith.mulf %17, %17 : vector<1x128xf32>
    %21 = arith.subf %19, %20 : vector<1x128xf32>
    %cst_15 = arith.constant 0.000000e+00 : f32
    %22 = vector.broadcast %cst_15 : f32 to vector<1x128xf32>
    %23 = arith.maximumf %21, %22 : vector<1x128xf32>
    %cst_16 = arith.constant 9.99999974E-6 : f32
    %24 = vector.broadcast %cst_16 : f32 to vector<1x128xf32>
    %25 = arith.addf %23, %24 : vector<1x128xf32>
    %26 = math.rsqrt %25 : vector<1x128xf32>
    %c0_17 = arith.constant 0 : index
    %c0_18 = arith.constant 0 : index
    %27 = vector.load %arg4[%c0_17, %c0_18] : memref<1x128xf32, #tpu.memory_space<vmem>>, vector<1x128xf32>
    %28 = arith.mulf %27, %26 : vector<1x128xf32>
    %c0_19 = arith.constant 0 : index
    %c0_20 = arith.constant 0 : index
    %29 = vector.load %arg5[%c0_19, %c0_20] : memref<1x128xf32, #tpu.memory_space<vmem>>, vector<1x128xf32>
    %30 = arith.mulf %17, %28 : vector<1x128xf32>
    %31 = arith.subf %29, %30 : vector<1x128xf32>
    %32 = vector.broadcast %28 : vector<1x128xf32> to vector<4x128xf32>
    %33 = arith.mulf %6, %32 : vector<4x128xf32>
    %34 = vector.broadcast %31 : vector<1x128xf32> to vector<4x128xf32>
    %35 = arith.addf %33, %34 : vector<4x128xf32>
    %cst_21 = arith.constant 0.000000e+00 : f32
    %36 = vector.broadcast %cst_21 : f32 to vector<4x128xf32>
    %37 = arith.maximumf %35, %36 : vector<4x128xf32>
    %c0_22 = arith.constant 0 : index
    %c0_23 = arith.constant 0 : index
    %38 = vector.load %arg6[%c0_22, %c0_23] : memref<4x128xf32, #tpu.memory_space<vmem>>, vector<4x128xf32>
    tpu.vector_store %arg6[%c0_22, %c0_23], %37 {strides = array<i32>} : memref<4x128xf32, #tpu.memory_space<vmem>>, vector<4x128xf32>,
    return
  }
}

</mosaic_0001>

<bundles_post_ra>
// kernel: tpu_custom_call.1
= control target key start
LH: loop header
LB: loop body
LE: loop exit
PB: predicated region body
PF: predicated region fallthrough
CT: control target
= control target key end

     0   :  { %11 = vsyncpa [#allocation3], 0  ;;  %s490_s0 = inlined_call_operand.hbm [shape: f32[4,128], index: 0, kind: input, shape index: {}]   ;;  %s491_s1 = inlined_call_operand.hbm [shape: bf16[128,128], index: 1, kind: input, shape index: {}]   ;;  %s492_s2 = inlined_call_operand.vmem [shape: f32[1,128], index: 2, kind: input, shape index: {}]   ;;  %s493_s3 = inlined_call_operand.hbm [shape: f32[128,128], index: 3, kind: input, shape index: {}]   ;;  %s494_s4 = inlined_call_operand.vmem [shape: f32[1,128], index: 4, kind: input, shape index: {}]   ;;  %s495_s5 = inlined_call_operand.vmem [shape: f32[1,128], index: 5, kind: input, shape index: {}]   ;;  %s496_s6 = inlined_call_operand.hbm [shape: f32[4,128], index: 6, kind: output, shape index: {}]  }
   0x1   :  { %12 = vsyncpa [#allocation6], 0  ;;  %s29_s23 = sshll.u32 %s491_s1, 4  ;;  %s30_s23 = int_to_ptr.hbm [resolvable:$true] %s29_s23 }
   0x2   :  { %13 = vsyncpa [#allocation4], 0  ;;  %s426_s24 = smov [#allocation5]   ;;  %s19_s28 = sshll.u32 %s490_s0, 4  ;;  %s20_s28 = int_to_ptr.hbm [resolvable:$true] %s19_s28 }
   0x3   :  { %s31_s25 = sshll.u32 %s426_s24, 4  ;;  %s427_s29 = smov 64   ;;  %s32_s25 = int_to_ptr.vmem [resolvable:$true] %s31_s25 }
   0x4   :  { %s428_s30 = smov 4   ;;  %s429_s7 = smov [#allocation2]  }
   0x5   :  { %37 = dma.hbm_to_vmem [thread:$0]  %s30_s23, 1024, %s32_s25, [#allocation6], %s427_s29, %s427_s29, %s428_s30  }
   0x6   :  { %s21_s8 = sshll.u32 %s429_s7, 4  ;;  %s44_s11 = sshll.u32 %s493_s3, 4  ;;  %s22_s8 = int_to_ptr.vmem [resolvable:$true] %s21_s8  ;;  %s45_s11 = int_to_ptr.hbm [resolvable:$true] %s44_s11 }
   0x7   :  { %24 = dma.hbm_to_vmem [thread:$0]  %s20_s28, 64, %s22_s8, [#allocation3]  }
   0x8   :  { %s430_s1 = smov [#allocation7]   ;;  %s431_s13 = smov 128  }
   0x9   :  { %s46_s12 = sshll.u32 %s430_s1, 4  ;;  %s432_s14 = smov 8   ;;  %s47_s12 = int_to_ptr.vmem [resolvable:$true] %s46_s12 }
   0xa   :  { %52 = dma.hbm_to_vmem [thread:$0]  %s45_s11, 2048, %s47_s12, [#allocation6], %s431_s13, %s431_s13, %s432_s14  }
   0xb   :  { %420 = dma.done.wait [#allocation3], 64  }
   0xc   :  { %421 = vsyncadd [#allocation3], 4294967232 }
   0xd   :  { %422 = dma.done.wait [#allocation6], 3072  }
   0xe   :  { %423 = vsyncadd [#allocation6], 4294964224  ;;  %v312_v0 = vld [vmem:[#allocation5 + $0x38] sm:$0xff]  ;;  %v311_v1 = vld [vmem:[#allocation5 + $0x30] sm:$0xff]  ;;  %vm152_vm0 = vcmask 1043456   ;;  %s433_s18 = smov [#allocation8]  }
   0xf   :  { %139 = vmatpush.bf16.msra.mxu0 %v312_v0  ;;  %v183_v2 = vld [vmem:[#allocation7 + $0x78] sm:$0xff]  ;;  %v182_v3 = vld [vmem:[#allocation7 + $0x70] sm:$0xff]  ;;  %v181_v4 = vld [vmem:[#allocation7 + $0x68] sm:$0xff]  ;;  %s260_s19 = sshll.u32 %s433_s18, 4  ;;  %s262_s22 = sshll.u32 %s496_s6, 4  ;;  %s261_s19 = int_to_ptr.vmem [resolvable:$true] %s260_s19  ;;  %s263_s22 = int_to_ptr.hbm [resolvable:$true] %s262_s22 }
  0x10   :  { %184 = vmatpush.msra.mxu1 %v183_v2  ;;  %204 = vmatpush.msra.mxu2 %v183_v2  ;;  %v310_v5 = vld [vmem:[#allocation5 + $0x28] sm:$0xff]  ;;  %v180_v6 = vld [vmem:[#allocation7 + $0x60] sm:$0xff]  ;;  %v179_v7 = vld [vmem:[#allocation7 + $0x58] sm:$0xff] }
  0x11   :  { %v309_v8 = vld [vmem:[#allocation5 + $0x20] sm:$0xff]  ;;  %v178_v9 = vld [vmem:[#allocation7 + $0x50] sm:$0xff]  ;;  %v177_v10 = vld [vmem:[#allocation7 + $0x48] sm:$0xff] }
  0x12   :  { %185 = vmatpush.msra.mxu1 %v182_v3  ;;  %205 = vmatpush.msra.mxu2 %v182_v3  ;;  %v308_v11 = vld [vmem:[#allocation5 + $0x18] sm:$0xff]  ;;  %v176_v12 = vld [vmem:[#allocation7 + $0x40] sm:$0xff]  ;;  %v307_v13 = vld [vmem:[#allocation5 + $0x10] sm:$0xff] }
  0x13   :  { %140 = vmatpush.bf16.msra.mxu0 %v311_v1  ;;  %v306_v14 = vld [vmem:[#allocation5 + $0x8] sm:$0xff]  ;;  %v305_v15 = vld [vmem:[#allocation5] sm:$0xff]  ;;  %v69_v16 = vld [vmem:[#allocation2] sm:$0xf] }
  0x14   :  { %186 = vmatpush.msra.mxu1 %v181_v4  ;;  %206 = vmatpush.msra.mxu2 %v181_v4  ;;  %v70_v17 = vpack.c.bf16 %v69_v16, %v69_v16  ;;  %v175_v18 = vld [vmem:[#allocation7 + $0x38] sm:$0xff]  ;;  %v174_v19 = vld [vmem:[#allocation7 + $0x30] sm:$0xff]  ;;  %v173_v20 = vld [vmem:[#allocation7 + $0x28] sm:$0xff] }
  0x15   :  { %v172_v21 = vld [vmem:[#allocation7 + $0x20] sm:$0xff]  ;;  %v171_v22 = vld [vmem:[#allocation7 + $0x18] sm:$0xff]  ;;  %v170_v23 = vld [vmem:[#allocation7 + $0x10] sm:$0xff] }
  0x16   :  { %187 = vmatpush.msra.mxu1 %v180_v6  ;;  %207 = vmatpush.msra.mxu2 %v180_v6  ;;  %v169_v24 = vld [vmem:[#allocation7 + $0x8] sm:$0xff]  ;;  %v168_v25 = vld [vmem:[#allocation7] sm:$0xff]  ;;  %v321_v26 = vld [vmem:[%s492_s2] ss:$0 sm:$0xff] }
  0x17   :  { %141 = vmatpush.bf16.msra.mxu0 %v310_v5  ;;  %v240_v59 = vld [vmem:[%s494_s4] sm:$0x1] }
  0x18   :  { %188 = vmatpush.msra.mxu1 %v179_v7  ;;  %208 = vmatpush.msra.mxu2 %v179_v7  ;;  %v242_v62 = vld [vmem:[%s495_s5] sm:$0x1] }
  0x1a   :  { %189 = vmatpush.msra.mxu1 %v178_v9  ;;  %209 = vmatpush.msra.mxu2 %v178_v9 }
  0x1b   :  { %142 = vmatpush.bf16.msra.mxu0 %v309_v8 }
  0x1c   :  { %190 = vmatpush.msra.mxu1 %v177_v10  ;;  %210 = vmatpush.msra.mxu2 %v177_v10 }
  0x1e   :  { %191 = vmatpush.msra.mxu1 %v176_v12  ;;  %211 = vmatpush.msra.mxu2 %v176_v12 }
  0x1f   :  { %143 = vmatpush.bf16.msra.mxu0 %v308_v11 }
  0x20   :  { %192 = vmatpush.msra.mxu1 %v175_v18  ;;  %212 = vmatpush.msra.mxu2 %v175_v18 }
  0x22   :  { %193 = vmatpush.msra.mxu1 %v174_v19  ;;  %213 = vmatpush.msra.mxu2 %v174_v19 }
  0x23   :  { %144 = vmatpush.bf16.msra.mxu0 %v307_v13 }
  0x24   :  { %194 = vmatpush.msra.mxu1 %v173_v20  ;;  %214 = vmatpush.msra.mxu2 %v173_v20 }
  0x26   :  { %195 = vmatpush.msra.mxu1 %v172_v21  ;;  %215 = vmatpush.msra.mxu2 %v172_v21 }
  0x27   :  { %145 = vmatpush.bf16.msra.mxu0 %v306_v14 }
  0x28   :  { %196 = vmatpush.msra.mxu1 %v171_v22  ;;  %216 = vmatpush.msra.mxu2 %v171_v22 }
  0x2a   :  { %197 = vmatpush.msra.mxu1 %v170_v23  ;;  %217 = vmatpush.msra.mxu2 %v170_v23 }
  0x2b   :  { %146 = vmatpush.bf16.msra.mxu0 %v305_v15 }
  0x2c   :  { %198 = vmatpush.msra.mxu1 %v169_v24  ;;  %218 = vmatpush.msra.mxu2 %v169_v24 }
  0x2e   :  { %147 = vmatmul.bf16.vlgmr.msra.gmra.mxu0 %v70_v17  ;;  %199 = vmatpush.msra.mxu1 %v168_v25 }
  0x2f   :  { %219 = vmatpush.msra.mxu2 %v168_v25 }
  0xab   :  { %v148_v27 = vpop.f32.mrf.mxu0 }
  0xac   :  { %v149_v28 = vadd.f32 %v321_v26, %v148_v27 }
  0xae   :  { %v153_v29 = vsel %vm152_vm0, %v149_v28, 0.0  ;;  %v160_v30 = vmul.f32 %v149_v28, %v149_v28 }
  0xaf   :  { %v154_v31 = vrot.slane %v153_v29, 4 }
  0xb0   :  { %v161_v32 = vsel %vm152_vm0, %v160_v30, 0.0 }
  0xb1   :  { %v155_v33 = vadd.f32 %v154_v31, %v153_v29  ;;  %v162_v34 = vrot.slane %v161_v32, 4 }
  0xb3   :  { %v150_v35 = vpop.f32.mrf.mxu0  ;;  %v156_v36 = vrot.slane %v155_v33, 2  ;;  %v163_v37 = vadd.f32 %v162_v34, %v161_v32 }
  0xb5   :  { %v157_v38 = vadd.f32 %v156_v36, %v155_v33  ;;  %v164_v39 = vrot.slane %v163_v37, 2 }
  0xb7   :  { %v158_v40 = vrot.slane %v157_v38, 1  ;;  %v165_v41 = vadd.f32 %v164_v39, %v163_v37 }
  0xb9   :  { %v159_v42 = vadd.f32 %v158_v40, %v157_v38  ;;  %v166_v43 = vrot.slane %v165_v41, 1 }
  0xbb   :  { %200 = vmatmul.f32.vlgmr.msra.gmra.mxu1 %v159_v42  ;;  %v167_v44 = vadd.f32 %v166_v43, %v165_v41 }
  0xbd   :  { %220 = vmatmul.f32.vlgmr.msra.gmra.mxu2 %v167_v44 }
 0x138   :  { %v201_v45 = vpop.f32.mrf.mxu1 }
 0x139   :  { %v224_v46 = vmul.f32 0.03125, %v201_v45 }
 0x13b   :  { %v226_v48 = vmul.f32 %v224_v46, %v224_v46 }
 0x140   :  { %v221_v47 = vpop.f32.mrf.mxu2 }
 0x141   :  { %v225_v49 = vmul.f32 0.03125, %v221_v47 }
 0x143   :  { %v227_v50 = vsub.f32 %v225_v49, %v226_v48 }
 0x145   :  { %v228_v51 = vmax.f32 %v227_v50, 0.0 }
 0x147   :  { %v229_v52 = vadd.f32 1e-05, %v228_v51 }
 0x149   :  { %322 = vrsqrt.f32 %v229_v52  ;;  %vm236_vm2 = vweird.f32 %v229_v52 }
 0x14f   :  { %v323_v53 = vpop.eup %322 }
 0x150   :  { %v231_v54 = vmul.f32 %v323_v53, %v229_v52  ;;  %vm237_vm1 = vweird.f32 %v323_v53 }
 0x151   :  { %vm238_vm3 = vmor %vm236_vm2, %vm237_vm1 }
 0x152   :  { %v232_v55 = vmul.f32 %v323_v53, %v231_v54 }
 0x154   :  { %v233_v56 = vmul.f32 0.5, %v232_v55 }
 0x156   :  { %v234_v57 = vsub.f32 1.5, %v233_v56 }
 0x158   :  { %v235_v58 = vmul.f32 %v323_v53, %v234_v57 }
 0x15a   :  { %v239_v60 = vsel %vm238_vm3, %v323_v53, %v235_v58 }
 0x15b   :  { %v241_v61 = vmul.f32 %v240_v59, %v239_v60 }
 0x15d   :  { %v243_v63 = vmul.f32 %v241_v61, %v224_v46  ;;  %v246_v0 = vperm.slane %v241_v61, 0 }
 0x15f   :  { %v244_v1 = vsub.f32 %v242_v62, %v243_v63  ;;  %v248_v2 = vmul.f32 %v246_v0, %v149_v28 }
 0x161   :  { %v250_v3 = vperm.slane %v244_v1, 0 }
 0x163   :  { %v252_v4 = vadd.f32 %v250_v3, %v248_v2 }
 0x165   :  { %v253_v5 = vmax.f32 %v252_v4, 0.0 }
 0x167   :  { %254 = vst [vmem:[#allocation8] sm:$0xf] %v253_v5 }
 0x168   :  { %265 = dma.vmem_to_hbm [thread:$0]  %s261_s19, 64, %s263_s22, [#allocation4]  }
 0x169   :  { %424 = dma.done.wait [#allocation4], 64  }
 0x16a   :  { %425 = vsyncadd [#allocation4], 4294967232 }
 0x16b   :  { %270 = vsyncpa [#allocation3], 1 }
 0x16c   :  { %271 = vsyncpa [#allocation6], 1 }
 0x16d   :  { %272 = vsyncpa [#allocation4], 1 }

</bundles_post_ra>
